<compile_context>
chip_gen: v5e
topology: v5e:2x2
jax: 0.10.0
libtpu: 0.0.40
codegen_flags: <defaults>
</compile_context>

<pallas_src>
import jax
import jax.numpy as jnp
from jax.experimental import pallas as pl
from jax.experimental.pallas import tpu as pltpu

INPUT_SIZE = 784
HIDDEN1 = 100
HIDDEN2 = 50
NUM_CLASSES = 10
LANES = 128   # lane-padded width for hidden feature dims (MXU/lane dense)
OUT_PAD = 16  # lane-padded logits width (10 -> 16); equals full array last dim


def _round_up(n, m):
    return ((n + m - 1) // m) * m


def _mlp_kernel(x_ref, w1_ref, b1_ref, w2_ref, b2_ref, w3_ref, b3_ref, o_ref):
    cdt = w1_ref.dtype  # MXU input dtype (f32 or bf16); accumulation is f32
    # Cast x to the MXU dtype inside the kernel (no wrapper-side HBM pass).
    x = x_ref[...].astype(cdt)                                  # (TB, 784)

    # fc1 + ReLU  (bias add / ReLU in f32 on the VPU)
    h1 = jnp.dot(x, w1_ref[...], preferred_element_type=jnp.float32)
    h1 = jnp.maximum(h1 + b1_ref[...], 0.0)                     # (TB, 128)

    # fc2 + ReLU
    h2 = jnp.dot(h1.astype(cdt), w2_ref[...], preferred_element_type=jnp.float32)
    h2 = jnp.maximum(h2 + b2_ref[...], 0.0)                     # (TB, 128)

    # fc3 (logits, no activation) -> small (TB, 16) store
    out = jnp.dot(h2.astype(cdt), w3_ref[...], preferred_element_type=jnp.float32)
    o_ref[...] = (out + b3_ref[...]).astype(o_ref.dtype)        # (TB, 16)


def prepare_params(params, use_bf16=True):
    """Zero-pad feature dims (hidden -> 128 lanes, logits -> 16 lanes).

    Padded rows/cols are zero, so padded lanes carry exact zeros through
    bias+ReLU and the downstream matmuls; results are unchanged after the
    final slice. Weights optionally bf16 (MXU-native on all generations);
    biases stay f32 (VPU math stays f32).
    """
    wdt = jnp.bfloat16 if use_bf16 else jnp.float32
    w1 = jnp.zeros((INPUT_SIZE, LANES), wdt).at[:, :HIDDEN1].set(
        params["w1"].astype(wdt))
    w2 = jnp.zeros((LANES, LANES), wdt).at[:HIDDEN1, :HIDDEN2].set(
        params["w2"].astype(wdt))
    w3 = jnp.zeros((LANES, OUT_PAD), wdt).at[:HIDDEN2, :NUM_CLASSES].set(
        params["w3"].astype(wdt))
    b1 = jnp.zeros((1, LANES), jnp.float32).at[0, :HIDDEN1].set(params["b1"])
    b2 = jnp.zeros((1, LANES), jnp.float32).at[0, :HIDDEN2].set(params["b2"])
    b3 = jnp.zeros((1, OUT_PAD), jnp.float32).at[0, :NUM_CLASSES].set(params["b3"])
    return {"w1": w1, "b1": b1, "w2": w2, "b2": b2, "w3": w3, "b3": b3}


def _choose_tb(B, block_b):
    """Batch tile: multiple of 16, >=2 tiles whenever B > 32 (feeds both v7x
    TensorCores), capped at block_b, minimal ragged-tail waste."""
    if B <= 32:
        return B  # single exact tile; block dims equal full array dims -> legal
    n_tiles = max(2, pl.cdiv(B, block_b))
    return min(_round_up(pl.cdiv(B, n_tiles), 16), block_b)


def nn_forward(x, prepared, *, block_b=1024):
    """x: (B, 784) float (f32 or bf16). prepared: output of prepare_params()."""
    B = x.shape[0]
    TB = _choose_tb(B, block_b)
    grid = (pl.cdiv(B, TB),)  # ragged tail handled by Pallas partial block — no jnp.pad

    def resident(shape):  # weights/biases: fetched once, stay in VMEM
        return pl.BlockSpec(shape, lambda i: (0, 0))

    bytes_accessed = (x.size * x.dtype.itemsize
                      + sum(int(v.size) * v.dtype.itemsize for v in prepared.values())
                      + B * OUT_PAD * 4)
    cost = pl.CostEstimate(
        flops=2 * B * (INPUT_SIZE * LANES + LANES * LANES + LANES * OUT_PAD),
        transcendentals=0,
        bytes_accessed=int(bytes_accessed))

    out = pl.pallas_call(
        _mlp_kernel,
        out_shape=jax.ShapeDtypeStruct((B, OUT_PAD), jnp.float32),
        grid=grid,
        in_specs=[
            pl.BlockSpec((TB, INPUT_SIZE), lambda i: (i, 0)),   # x: streamed tiles
            resident((INPUT_SIZE, LANES)),                      # w1
            resident((1, LANES)),                               # b1
            resident((LANES, LANES)),                           # w2
            resident((1, LANES)),                               # b2
            resident((LANES, OUT_PAD)),                         # w3
            resident((1, OUT_PAD)),                             # b3
        ],
        out_specs=pl.BlockSpec((TB, OUT_PAD), lambda i: (i, 0)),
        compiler_params=pltpu.CompilerParams(
            dimension_semantics=("parallel",),                  # v7x: shard tiles over 2 TCs
        ),
        cost_estimate=cost,
    )(x, prepared["w1"], prepared["b1"], prepared["w2"], prepared["b2"],
      prepared["w3"], prepared["b3"])

    return out[:, :NUM_CLASSES]   # tiny (B, 16) -> (B, 10) slice


def init_params(key):
    """Deterministic init mirroring nn.Linear's default U(-1/sqrt(fan_in), +)."""
    ks = jax.random.split(key, 6)

    def linear(kw, kb, fan_in, fan_out):
        bound = 1.0 / jnp.sqrt(fan_in)
        # stored as (in, out) so the kernel does x @ W  (== PyTorch x @ W.T)
        w = jax.random.uniform(kw, (fan_in, fan_out), jnp.float32, -bound, bound)
        b = jax.random.uniform(kb, (fan_out,), jnp.float32, -bound, bound)
        return w, b

    w1, b1 = linear(ks[0], ks[1], INPUT_SIZE, HIDDEN1)
    w2, b2 = linear(ks[2], ks[3], HIDDEN1, HIDDEN2)
    w3, b3 = linear(ks[4], ks[5], HIDDEN2, NUM_CLASSES)
    return {"w1": w1, "b1": b1, "w2": w2, "b2": b2, "w3": w3, "b3": b3}


def _reference(x, p):
    h1 = jnp.maximum(x @ p["w1"] + p["b1"], 0.0)
    h2 = jnp.maximum(h1 @ p["w2"] + p["b2"], 0.0)
    return h2 @ p["w3"] + p["b3"]


if __name__ == "__main__":
    key = jax.random.PRNGKey(0)
    k_x, k_p, k_x2 = jax.random.split(key, 3)
    params = init_params(k_p)

    # 1) Small batch, pure f32 path — exact semantics of the PyTorch module.
    B = 8
    x = jax.random.normal(k_x, (B, INPUT_SIZE), jnp.float32)
    ref = _reference(x, params)
    out_f32 = jax.block_until_ready(
        nn_forward(x, prepare_params(params, use_bf16=False)))
    assert out_f32.shape == (B, NUM_CLASSES)
    assert jnp.allclose(out_f32, ref, atol=1e-4, rtol=1e-4), "f32 mismatch vs reference"

    # 2) Multi-tile grid with a ragged tail + bf16 MXU-input path
    #    (exercises >=2 "parallel" tiles and the masked partial last block).
    B2 = 173
    x2 = jax.random.normal(k_x2, (B2, INPUT_SIZE), jnp.float32)
    ref2 = _reference(x2, params)
    out_bf16 = jax.block_until_ready(
        nn_forward(x2, prepare_params(params, use_bf16=True), block_b=64))
    assert out_bf16.shape == (B2, NUM_CLASSES)
    assert jnp.allclose(out_bf16, ref2, atol=5e-2, rtol=5e-2), "bf16 mismatch vs reference"

    print("KERNEL_OK")
</pallas_src>

<mosaic_0001>
module attributes {stable_mosaic.version = 11 : i64} {
  func.func @_mlp_kernel(%arg0: i32, %arg1: memref<8x784xf32, #tpu.memory_space<vmem>>, %arg2: memref<784x128xf32, #tpu.memory_space<vmem>>, %arg3: memref<1x128xf32, #tpu.memory_space<vmem>>, %arg4: memref<128x128xf32, #tpu.memory_space<vmem>>, %arg5: memref<1x128xf32, #tpu.memory_space<vmem>>, %arg6: memref<128x16xf32, #tpu.memory_space<vmem>>, %arg7: memref<1x16xf32, #tpu.memory_space<vmem>>, %arg8: memref<8x16xf32, #tpu.memory_space<vmem>>) attributes {dimension_semantics = [#tpu.dimension_semantics<parallel>], iteration_bounds = array<i64: 1>, scalar_prefetch = 0 : i64, scratch_operands = 0 : i64, tpu.core_type = #tpu.core_type<tc>, window_params = [{transform_indices = @transform_0, window_bounds = array<i64: 8, 784>}, {pipeline_mode = #tpu.pipeline_mode<synchronous>, transform_indices = @transform_1, window_bounds = array<i64: 784, 128>}, {pipeline_mode = #tpu.pipeline_mode<synchronous>, transform_indices = @transform_2, window_bounds = array<i64: 1, 128>}, {pipeline_mode = #tpu.pipeline_mode<synchronous>, transform_indices = @transform_3, window_bounds = array<i64: 128, 128>}, {pipeline_mode = #tpu.pipeline_mode<synchronous>, transform_indices = @transform_4, window_bounds = array<i64: 1, 128>}, {pipeline_mode = #tpu.pipeline_mode<synchronous>, transform_indices = @transform_5, window_bounds = array<i64: 128, 16>}, {pipeline_mode = #tpu.pipeline_mode<synchronous>, transform_indices = @transform_6, window_bounds = array<i64: 1, 16>}, {transform_indices = @transform_7, window_bounds = array<i64: 8, 16>}]} {
    %c0 = arith.constant 0 : index
    %c0_0 = arith.constant 0 : index
    %0 = vector.load %arg1[%c0, %c0_0] : memref<8x784xf32, #tpu.memory_space<vmem>>, vector<8x784xf32>
    %c0_1 = arith.constant 0 : index
    %c0_2 = arith.constant 0 : index
    %1 = vector.load %arg2[%c0_1, %c0_2] : memref<784x128xf32, #tpu.memory_space<vmem>>, vector<784x128xf32>
    %cst = arith.constant dense<0.000000e+00> : vector<8x128xf32>
    %2 = tpu.matmul %0, %1, %cst {dimension_numbers = #tpu.dot_dimension_numbers<[1], [0], [0], [1], [0, 0, 1, 1], [], []>} : vector<8x784xf32>, vector<784x128xf32>, vector<8x128xf32> -> vector<8x128xf32>
    %c0_3 = arith.constant 0 : index
    %c0_4 = arith.constant 0 : index
    %3 = vector.load %arg3[%c0_3, %c0_4] : memref<1x128xf32, #tpu.memory_space<vmem>>, vector<1x128xf32>
    %4 = vector.broadcast %3 : vector<1x128xf32> to vector<8x128xf32>
    %5 = arith.addf %2, %4 : vector<8x128xf32>
    %cst_5 = arith.constant 0.000000e+00 : f32
    %6 = vector.broadcast %cst_5 : f32 to vector<8x128xf32>
    %7 = arith.maximumf %5, %6 : vector<8x128xf32>
    %c0_6 = arith.constant 0 : index
    %c0_7 = arith.constant 0 : index
    %8 = vector.load %arg4[%c0_6, %c0_7] : memref<128x128xf32, #tpu.memory_space<vmem>>, vector<128x128xf32>
    %cst_8 = arith.constant dense<0.000000e+00> : vector<8x128xf32>
    %9 = tpu.matmul %7, %8, %cst_8 {dimension_numbers = #tpu.dot_dimension_numbers<[1], [0], [0], [1], [0, 0, 1, 1], [], []>} : vector<8x128xf32>, vector<128x128xf32>, vector<8x128xf32> -> vector<8x128xf32>
    %c0_9 = arith.constant 0 : index
    %c0_10 = arith.constant 0 : index
    %10 = vector.load %arg5[%c0_9, %c0_10] : memref<1x128xf32, #tpu.memory_space<vmem>>, vector<1x128xf32>
    %11 = vector.broadcast %10 : vector<1x128xf32> to vector<8x128xf32>
    %12 = arith.addf %9, %11 : vector<8x128xf32>
    %cst_11 = arith.constant 0.000000e+00 : f32
    %13 = vector.broadcast %cst_11 : f32 to vector<8x128xf32>
    %14 = arith.maximumf %12, %13 : vector<8x128xf32>
    %c0_12 = arith.constant 0 : index
    %c0_13 = arith.constant 0 : index
    %15 = vector.load %arg6[%c0_12, %c0_13] : memref<128x16xf32, #tpu.memory_space<vmem>>, vector<128x16xf32>
    %cst_14 = arith.constant dense<0.000000e+00> : vector<8x16xf32>
    %16 = tpu.matmul %14, %15, %cst_14 {dimension_numbers = #tpu.dot_dimension_numbers<[1], [0], [0], [1], [0, 0, 1, 1], [], []>} : vector<8x128xf32>, vector<128x16xf32>, vector<8x16xf32> -> vector<8x16xf32>
    %c0_15 = arith.constant 0 : index
    %c0_16 = arith.constant 0 : index
    %17 = vector.load %arg7[%c0_15, %c0_16] : memref<1x16xf32, #tpu.memory_space<vmem>>, vector<1x16xf32>
    %18 = vector.broadcast %17 : vector<1x16xf32> to vector<8x16xf32>
    %19 = arith.addf %16, %18 : vector<8x16xf32>
    %c0_17 = arith.constant 0 : index
    %c0_18 = arith.constant 0 : index
    %20 = vector.load %arg8[%c0_17, %c0_18] : memref<8x16xf32, #tpu.memory_space<vmem>>, vector<8x16xf32>
    tpu.vector_store %arg8[%c0_17, %c0_18], %19 {strides = array<i32>} : memref<8x16xf32, #tpu.memory_space<vmem>>, vector<8x16xf32>,
    return
  }
  func.func @transform_0(%arg0: i32) -> (i32, i32) {
    %c0_i32 = arith.constant 0 : i32
    %c0_i32_0 = arith.constant 0 : i32
    return %arg0, %c0_i32 : i32, i32
  }
  func.func @transform_1(%arg0: i32) -> (i32, i32) {
    %c0_i32 = arith.constant 0 : i32
    %c0_i32_0 = arith.constant 0 : i32
    %c0_i32_1 = arith.constant 0 : i32
    return %c0_i32, %c0_i32_0 : i32, i32
  }
  func.func @transform_2(%arg0: i32) -> (i32, i32) {
    %c0_i32 = arith.constant 0 : i32
    %c0_i32_0 = arith.constant 0 : i32
    %c0_i32_1 = arith.constant 0 : i32
    return %c0_i32, %c0_i32_0 : i32, i32
  }
  func.func @transform_3(%arg0: i32) -> (i32, i32) {
    %c0_i32 = arith.constant 0 : i32
    %c0_i32_0 = arith.constant 0 : i32
    %c0_i32_1 = arith.constant 0 : i32
    return %c0_i32, %c0_i32_0 : i32, i32
  }
  func.func @transform_4(%arg0: i32) -> (i32, i32) {
    %c0_i32 = arith.constant 0 : i32
    %c0_i32_0 = arith.constant 0 : i32
    %c0_i32_1 = arith.constant 0 : i32
    return %c0_i32, %c0_i32_0 : i32, i32
  }
  func.func @transform_5(%arg0: i32) -> (i32, i32) {
    %c0_i32 = arith.constant 0 : i32
    %c0_i32_0 = arith.constant 0 : i32
    %c0_i32_1 = arith.constant 0 : i32
    return %c0_i32, %c0_i32_0 : i32, i32
  }
  func.func @transform_6(%arg0: i32) -> (i32, i32) {
    %c0_i32 = arith.constant 0 : i32
    %c0_i32_0 = arith.constant 0 : i32
    %c0_i32_1 = arith.constant 0 : i32
    return %c0_i32, %c0_i32_0 : i32, i32
  }
  func.func @transform_7(%arg0: i32) -> (i32, i32) {
    %c0_i32 = arith.constant 0 : i32
    %c0_i32_0 = arith.constant 0 : i32
    return %arg0, %c0_i32 : i32, i32
  }
}

</mosaic_0001>

<bundles_post_ra>
// kernel: tpu_custom_call.1
= control target key start
LH: loop header
LB: loop body
LE: loop exit
PB: predicated region body
PF: predicated region fallthrough
CT: control target
= control target key end

     0   :  { %12 = vsyncpa [#allocation3], 0  ;;  %s659_s0 = inlined_call_operand.hbm [shape: f32[8,784], index: 0, kind: input, shape index: {}]   ;;  %s660_s1 = inlined_call_operand.hbm [shape: f32[784,128], index: 1, kind: input, shape index: {}]   ;;  %s661_s2 = inlined_call_operand.vmem [shape: f32[1,128], index: 2, kind: input, shape index: {}]   ;;  %s662_s3 = inlined_call_operand.vmem [shape: f32[128,128], index: 3, kind: input, shape index: {}]   ;;  %s663_s4 = inlined_call_operand.vmem [shape: f32[1,128], index: 4, kind: input, shape index: {}]   ;;  %s664_s5 = inlined_call_operand.vmem [shape: f32[128,16], index: 5, kind: input, shape index: {}]   ;;  %s665_s6 = inlined_call_operand.vmem [shape: f32[1,16], index: 6, kind: input, shape index: {}]   ;;  %s666_s7 = inlined_call_operand.hbm [shape: f32[8,16], index: 7, kind: output, shape index: {}]  }
   0x1   :  { %13 = vsyncpa [#allocation6], 0 }
   0x2   :  { %14 = vsyncpa [#allocation4], 0  ;;  %s20_s26 = sshll.u32 %s659_s0, 4  ;;  %s498_s27 = smov [#allocation2]   ;;  %s21_s26 = int_to_ptr.hbm [resolvable:$true] %s20_s26 }
   0x3   :  { %s22_s28 = sshll.u32 %s498_s27, 4  ;;  %s30_s8 = sshll.u32 %s660_s1, 4  ;;  %s23_s28 = int_to_ptr.vmem [resolvable:$true] %s22_s28  ;;  %s31_s8 = int_to_ptr.hbm [resolvable:$true] %s30_s8 }
   0x4   :  { %25 = dma.hbm_to_vmem [thread:$0]  %s21_s26, 896, %s23_s28, [#allocation3]  }
   0x5   :  { %s499_s9 = smov [#allocation5]   ;;  %s500_s11 = smov 128  }
   0x6   :  { %s32_s10 = sshll.u32 %s499_s9, 4  ;;  %s501_s12 = smov 8   ;;  %s33_s10 = int_to_ptr.vmem [resolvable:$true] %s32_s10 }
   0x7   :  { %38 = dma.hbm_to_vmem [thread:$0]  %s31_s8, 12544, %s33_s10, [#allocation6], %s500_s11, %s500_s11, %s501_s12  }
   0x8   :  { %492 = dma.done.wait [#allocation3], 896  }
   0x9   :  { %493 = vsyncadd [#allocation3], 4294966400 }
   0xa   :  { %494 = dma.done.wait [#allocation6], 12544  }
   0xb   :  { %495 = vsyncadd [#allocation6], 4294954752  ;;  %v79_v0 = vld [vmem:[#allocation5 + $0x78] sm:$0xff]  ;;  %v78_v1 = vld [vmem:[#allocation5 + $0x70] sm:$0xff]  ;;  %vm166_vm0 = vcmask 130048   ;;  %s502_s28 = smov [#allocation7]  }
   0xc   :  { %v95_v2 = vld [vmem:[#allocation5 + $0xf8] sm:$0xff]  ;;  %170 = vmatpush.msra.mxu0 %v79_v0  ;;  %v94_v3 = vld [vmem:[#allocation5 + $0xf0] sm:$0xff]  ;;  %v77_v4 = vld [vmem:[#allocation5 + $0x68] sm:$0xff]  ;;  %s398_s29 = sshll.u32 %s502_s28, 4  ;;  %s399_s29 = int_to_ptr.vmem [resolvable:$true] %s398_s29 }
   0xd   :  { %190 = vmatpush.msra.mxu1 %v95_v2  ;;  %v93_v5 = vld [vmem:[#allocation5 + $0xe8] sm:$0xff]  ;;  %v76_v6 = vld [vmem:[#allocation5 + $0x60] sm:$0xff]  ;;  %v75_v8 = vld [vmem:[#allocation5 + $0x58] sm:$0xff] }
   0xe   :  { %171 = vmatpush.msra.mxu0 %v78_v1  ;;  %v92_v7 = vld [vmem:[#allocation5 + $0xe0] sm:$0xff]  ;;  %v91_v9 = vld [vmem:[#allocation5 + $0xd8] sm:$0xff]  ;;  %v74_v10 = vld [vmem:[#allocation5 + $0x50] sm:$0xff] }
   0xf   :  { %191 = vmatpush.msra.mxu1 %v94_v3  ;;  %v111_v11 = vld [vmem:[#allocation5 + $0x178] sm:$0xff]  ;;  %v90_v12 = vld [vmem:[#allocation5 + $0xd0] sm:$0xff]  ;;  %v109_v15 = vld [vmem:[#allocation5 + $0x168] sm:$0xff] }
  0x10   :  { %172 = vmatpush.msra.mxu0 %v77_v4  ;;  %210 = vmatpush.msra.mxu2 %v111_v11  ;;  %v110_v13 = vld [vmem:[#allocation5 + $0x170] sm:$0xff]  ;;  %v127_v14 = vld [vmem:[#allocation5 + $0x1f8] sm:$0xff]  ;;  %v73_v17 = vld [vmem:[#allocation5 + $0x48] sm:$0xff] }
  0x11   :  { %192 = vmatpush.msra.mxu1 %v93_v5  ;;  %v126_v16 = vld [vmem:[#allocation5 + $0x1f0] sm:$0xff]  ;;  %v89_v18 = vld [vmem:[#allocation5 + $0xc8] sm:$0xff]  ;;  %230 = vmatpush.msra.mxu3 %v127_v14  ;;  %v108_v19 = vld [vmem:[#allocation5 + $0x160] sm:$0xff] }
  0x12   :  { %173 = vmatpush.msra.mxu0 %v76_v6  ;;  %211 = vmatpush.msra.mxu2 %v110_v13  ;;  %v125_v20 = vld [vmem:[#allocation5 + $0x1e8] sm:$0xff]  ;;  %v72_v21 = vld [vmem:[#allocation5 + $0x40] sm:$0xff]  ;;  %v107_v23 = vld [vmem:[#allocation5 + $0x158] sm:$0xff] }
  0x13   :  { %193 = vmatpush.msra.mxu1 %v92_v7  ;;  %v88_v22 = vld [vmem:[#allocation5 + $0xc0] sm:$0xff]  ;;  %231 = vmatpush.msra.mxu3 %v126_v16  ;;  %v71_v25 = vld [vmem:[#allocation5 + $0x38] sm:$0xff]  ;;  %v106_v27 = vld [vmem:[#allocation5 + $0x150] sm:$0xff] }
  0x14   :  { %174 = vmatpush.msra.mxu0 %v75_v8  ;;  %212 = vmatpush.msra.mxu2 %v109_v15  ;;  %v124_v24 = vld [vmem:[#allocation5 + $0x1e0] sm:$0xff]  ;;  %v87_v26 = vld [vmem:[#allocation5 + $0xb8] sm:$0xff]  ;;  %v70_v29 = vld [vmem:[#allocation5 + $0x30] sm:$0xff] }
  0x15   :  { %194 = vmatpush.msra.mxu1 %v91_v9  ;;  %232 = vmatpush.msra.mxu3 %v125_v20  ;;  %v123_v28 = vld [vmem:[#allocation5 + $0x1d8] sm:$0xff]  ;;  %v86_v30 = vld [vmem:[#allocation5 + $0xb0] sm:$0xff]  ;;  %v105_v31 = vld [vmem:[#allocation5 + $0x148] sm:$0xff] }
  0x16   :  { %175 = vmatpush.msra.mxu0 %v74_v10  ;;  %213 = vmatpush.msra.mxu2 %v108_v19  ;;  %v122_v32 = vld [vmem:[#allocation5 + $0x1d0] sm:$0xff]  ;;  %v69_v33 = vld [vmem:[#allocation5 + $0x28] sm:$0xff]  ;;  %v104_v35 = vld [vmem:[#allocation5 + $0x140] sm:$0xff] }
  0x17   :  { %195 = vmatpush.msra.mxu1 %v90_v12  ;;  %233 = vmatpush.msra.mxu3 %v124_v24  ;;  %v85_v34 = vld [vmem:[#allocation5 + $0xa8] sm:$0xff]  ;;  %v68_v37 = vld [vmem:[#allocation5 + $0x20] sm:$0xff]  ;;  %v103_v39 = vld [vmem:[#allocation5 + $0x138] sm:$0xff] }
  0x18   :  { %176 = vmatpush.msra.mxu0 %v73_v17  ;;  %214 = vmatpush.msra.mxu2 %v107_v23  ;;  %v121_v36 = vld [vmem:[#allocation5 + $0x1c8] sm:$0xff]  ;;  %v84_v38 = vld [vmem:[#allocation5 + $0xa0] sm:$0xff]  ;;  %v67_v41 = vld [vmem:[#allocation5 + $0x18] sm:$0xff] }
  0x19   :  { %196 = vmatpush.msra.mxu1 %v89_v18  ;;  %234 = vmatpush.msra.mxu3 %v123_v28  ;;  %v120_v40 = vld [vmem:[#allocation5 + $0x1c0] sm:$0xff]  ;;  %v83_v42 = vld [vmem:[#allocation5 + $0x98] sm:$0xff]  ;;  %v102_v43 = vld [vmem:[#allocation5 + $0x130] sm:$0xff] }
  0x1a   :  { %177 = vmatpush.msra.mxu0 %v72_v21  ;;  %215 = vmatpush.msra.mxu2 %v106_v27  ;;  %v119_v44 = vld [vmem:[#allocation5 + $0x1b8] sm:$0xff]  ;;  %v66_v45 = vld [vmem:[#allocation5 + $0x10] sm:$0xff]  ;;  %v101_v47 = vld [vmem:[#allocation5 + $0x128] sm:$0xff] }
  0x1b   :  { %197 = vmatpush.msra.mxu1 %v88_v22  ;;  %235 = vmatpush.msra.mxu3 %v122_v32  ;;  %v82_v46 = vld [vmem:[#allocation5 + $0x90] sm:$0xff]  ;;  %v65_v49 = vld [vmem:[#allocation5 + $0x8] sm:$0xff]  ;;  %v100_v51 = vld [vmem:[#allocation5 + $0x120] sm:$0xff] }
  0x1c   :  { %178 = vmatpush.msra.mxu0 %v71_v25  ;;  %216 = vmatpush.msra.mxu2 %v105_v31  ;;  %v118_v48 = vld [vmem:[#allocation5 + $0x1b0] sm:$0xff]  ;;  %v81_v50 = vld [vmem:[#allocation5 + $0x88] sm:$0xff]  ;;  %v64_v53 = vld [vmem:[#allocation5] sm:$0xff] }
  0x1d   :  { %198 = vmatpush.msra.mxu1 %v87_v26  ;;  %236 = vmatpush.msra.mxu3 %v121_v36  ;;  %v117_v52 = vld [vmem:[#allocation5 + $0x1a8] sm:$0xff]  ;;  %v80_v54 = vld [vmem:[#allocation5 + $0x80] sm:$0xff]  ;;  %v143_v55 = vld [vmem:[#allocation5 + $0x278] sm:$0xff] }
  0x1e   :  { %179 = vmatpush.msra.mxu0 %v70_v29  ;;  %217 = vmatpush.msra.mxu2 %v104_v35  ;;  %v159_v56 = vld [vmem:[#allocation5 + $0x2f8] sm:$0xff]  ;;  %v116_v58 = vld [vmem:[#allocation5 + $0x1a0] sm:$0xff]  ;;  %v142_v59 = vld [vmem:[#allocation5 + $0x270] sm:$0xff] }
  0x1f   :  { %199 = vmatpush.msra.mxu1 %v86_v30  ;;  %237 = vmatpush.msra.mxu3 %v120_v40  ;;  %v99_v57 = vld [vmem:[#allocation5 + $0x118] sm:$0xff]  ;;  %v158_v60 = vld [vmem:[#allocation5 + $0x2f0] sm:$0xff]  ;;  %v141_v63 = vld [vmem:[#allocation5 + $0x268] sm:$0xff] }
  0x20   :  { %180 = vmatpush.msra.mxu0 %v69_v33  ;;  %218 = vmatpush.msra.mxu2 %v103_v39  ;;  %v98_v61 = vld [vmem:[#allocation5 + $0x110] sm:$0xff]  ;;  %v115_v62 = vld [vmem:[#allocation5 + $0x198] sm:$0xff]  ;;  %v157_v0 = vld [vmem:[#allocation5 + $0x2e8] sm:$0xff] }
  0x21   :  { %200 = vmatpush.msra.mxu1 %v85_v34  ;;  %238 = vmatpush.msra.mxu3 %v119_v44  ;;  %v97_v1 = vld [vmem:[#allocation5 + $0x108] sm:$0xff]  ;;  %v114_v2 = vld [vmem:[#allocation5 + $0x190] sm:$0xff]  ;;  %v140_v3 = vld [vmem:[#allocation5 + $0x260] sm:$0xff] }
  0x22   :  { %181 = vmatpush.msra.mxu0 %v68_v37  ;;  %219 = vmatpush.msra.mxu2 %v102_v43  ;;  %v156_v4 = vld [vmem:[#allocation5 + $0x2e0] sm:$0xff]  ;;  %v139_v5 = vld [vmem:[#allocation5 + $0x258] sm:$0xff]  ;;  %v113_v7 = vld [vmem:[#allocation5 + $0x188] sm:$0xff] }
  0x23   :  { %201 = vmatpush.msra.mxu1 %v84_v38  ;;  %239 = vmatpush.msra.mxu3 %v118_v48  ;;  %v96_v6 = vld [vmem:[#allocation5 + $0x100] sm:$0xff]  ;;  %v155_v8 = vld [vmem:[#allocation5 + $0x2d8] sm:$0xff]  ;;  %v138_v11 = vld [vmem:[#allocation5 + $0x250] sm:$0xff] }
  0x24   :  { %182 = vmatpush.msra.mxu0 %v67_v41  ;;  %220 = vmatpush.msra.mxu2 %v101_v47  ;;  %v59_v9 = vld [vmem:[#allocation2 + $0x10] sm:$0xff]  ;;  %v112_v10 = vld [vmem:[#allocation5 + $0x180] sm:$0xff]  ;;  %v154_v12 = vld [vmem:[#allocation5 + $0x2d0] sm:$0xff] }
  0x25   :  { %202 = vmatpush.msra.mxu1 %v83_v42  ;;  %240 = vmatpush.msra.mxu3 %v117_v52  ;;  %v161_v13 = vld [vmem:[#allocation5 + $0x308] sm:$0xff]  ;;  %v60_v17 = vld [vmem:[#allocation2 + $0x18] sm:$0xff]  ;;  %v58_v18 = vld [vmem:[#allocation2 + $0x8] sm:$0xff] }
  0x26   :  { %183 = vmatpush.msra.mxu0 %v66_v45  ;;  %221 = vmatpush.msra.mxu2 %v100_v51  ;;  %v57_v14 = vld [vmem:[#allocation2] sm:$0xff]  ;;  %v136_v19 = vld [vmem:[#allocation5 + $0x240] sm:$0xff]  ;;  %v135_v23 = vld [vmem:[#allocation5 + $0x238] sm:$0xff] }
  0x27   :  { %203 = vmatpush.msra.mxu1 %v82_v46  ;;  %241 = vmatpush.msra.mxu3 %v116_v58  ;;  %v137_v15 = vld [vmem:[#allocation5 + $0x248] sm:$0xff]  ;;  %v152_v20 = vld [vmem:[#allocation5 + $0x2c0] sm:$0xff]  ;;  %v151_v24 = vld [vmem:[#allocation5 + $0x2b8] sm:$0xff] }
  0x28   :  { %184 = vmatpush.msra.mxu0 %v65_v49  ;;  %222 = vmatpush.msra.mxu2 %v99_v57  ;;  %v153_v16 = vld [vmem:[#allocation5 + $0x2c8] sm:$0xff]  ;;  %v160_v21 = vld [vmem:[#allocation5 + $0x300] sm:$0xff]  ;;  %v63_v25 = vld [vmem:[#allocation2 + $0x30] sm:$0xff] }
  0x29   :  { %204 = vmatpush.msra.mxu1 %v81_v50  ;;  %242 = vmatpush.msra.mxu3 %v115_v62  ;;  %v326_v22 = vld [vmem:[%s662_s3 + $0x78] sm:$0xff]  ;;  %v325_v26 = vld [vmem:[%s662_s3 + $0x70] sm:$0xff]  ;;  %v134_v27 = vld [vmem:[#allocation5 + $0x230] sm:$0xff] }
  0x2a   :  { %185 = vmatpush.msra.mxu0 %v64_v53  ;;  %223 = vmatpush.msra.mxu2 %v98_v61  ;;  %v150_v28 = vld [vmem:[#allocation5 + $0x2b0] sm:$0xff]  ;;  %v133_v30 = vld [vmem:[#allocation5 + $0x228] sm:$0xff]  ;;  %v132_v33 = vld [vmem:[#allocation5 + $0x220] sm:$0xff] }
  0x2b   :  { %205 = vmatpush.msra.mxu1 %v80_v54  ;;  %243 = vmatpush.msra.mxu3 %v114_v2  ;;  %v324_v29 = vld [vmem:[%s662_s3 + $0x68] sm:$0xff]  ;;  %v149_v31 = vld [vmem:[#allocation5 + $0x2a8] sm:$0xff]  ;;  %v148_v34 = vld [vmem:[#allocation5 + $0x2a0] sm:$0xff] }
  0x2c   :  { %250 = vmatpush.msrb.mxu0 %v143_v55  ;;  %224 = vmatpush.msra.mxu2 %v97_v1  ;;  %v323_v32 = vld [vmem:[%s662_s3 + $0x60] sm:$0xff]  ;;  %v322_v35 = vld [vmem:[%s662_s3 + $0x58] sm:$0xff]  ;;  %v131_v36 = vld [vmem:[#allocation5 + $0x218] sm:$0xff] }
  0x2d   :  { %270 = vmatpush.msrb.mxu1 %v159_v56  ;;  %244 = vmatpush.msra.mxu3 %v113_v7  ;;  %v147_v37 = vld [vmem:[#allocation5 + $0x298] sm:$0xff]  ;;  %v130_v39 = vld [vmem:[#allocation5 + $0x210] sm:$0xff]  ;;  %v129_v42 = vld [vmem:[#allocation5 + $0x208] sm:$0xff] }
  0x2e   :  { %251 = vmatpush.msrb.mxu0 %v142_v59  ;;  %225 = vmatpush.msra.mxu2 %v96_v6  ;;  %v321_v38 = vld [vmem:[%s662_s3 + $0x50] sm:$0xff]  ;;  %v146_v40 = vld [vmem:[#allocation5 + $0x290] sm:$0xff]  ;;  %v145_v43 = vld [vmem:[#allocation5 + $0x288] sm:$0xff] }
  0x2f   :  { %271 = vmatpush.msrb.mxu1 %v158_v60  ;;  %226 = vmatmul.f32.vlgmr.msra.gmra.mxu2 %v59_v9  ;;  %v320_v41 = vld [vmem:[%s662_s3 + $0x48] sm:$0xff]  ;;  %v128_v44 = vld [vmem:[#allocation5 + $0x200] sm:$0xff]  ;;  %v61_v46 = vld [vmem:[#allocation2 + $0x20] sm:$0xff] }
  0x30   :  { %252 = vmatpush.msrb.mxu0 %v141_v63  ;;  %245 = vmatpush.msra.mxu3 %v112_v10  ;;  %v144_v45 = vld [vmem:[#allocation5 + $0x280] sm:$0xff]  ;;  %v62_v47 = vld [vmem:[#allocation2 + $0x28] sm:$0xff]  ;;  %v319_v48 = vld [vmem:[%s662_s3 + $0x40] sm:$0xff] }
  0x31   :  { %272 = vmatpush.msrb.mxu1 %v157_v0  ;;  %304 = vmatpush.msrb.mxu2 %v161_v13  ;;  %v318_v49 = vld [vmem:[%s662_s3 + $0x38] sm:$0xff]  ;;  %v317_v50 = vld [vmem:[%s662_s3 + $0x30] sm:$0xff]  ;;  %v316_v51 = vld [vmem:[%s662_s3 + $0x28] sm:$0xff] }
  0x32   :  { %253 = vmatpush.msrb.mxu0 %v140_v3  ;;  %246 = vmatmul.f32.vlgmr.msra.gmra.mxu3 %v60_v17  ;;  %v315_v52 = vld [vmem:[%s662_s3 + $0x20] sm:$0xff]  ;;  %v314_v53 = vld [vmem:[%s662_s3 + $0x18] sm:$0xff]  ;;  %v313_v54 = vld [vmem:[%s662_s3 + $0x10] sm:$0xff] }
  0x33   :  { %273 = vmatpush.msrb.mxu1 %v156_v4  ;;  %186 = vmatmul.f32.vlgmr.msra.gmra.mxu0 %v57_v14  ;;  %v312_v55 = vld [vmem:[%s662_s3 + $0x8] sm:$0xff]  ;;  %v311_v56 = vld [vmem:[%s662_s3] sm:$0xff]  ;;  %v367_v57 = vld [vmem:[%s664_s5 + $0x78] sm:$0xff] }
  0x34   :  { %254 = vmatpush.msrb.mxu0 %v139_v5  ;;  %206 = vmatmul.f32.vlgmr.msra.gmra.mxu1 %v58_v18  ;;  %v366_v58 = vld [vmem:[%s664_s5 + $0x70] sm:$0xff]  ;;  %v365_v59 = vld [vmem:[%s664_s5 + $0x68] sm:$0xff]  ;;  %v417_v60 = vld [vmem:[%s661_s2] ss:$0 sm:$0xff]  ;;  %s400_s2 = sshll.u32 %s666_s7, 4  ;;  %s401_s2 = int_to_ptr.hbm [resolvable:$true] %s400_s2 }
  0x35   :  { %274 = vmatpush.msrb.mxu1 %v155_v8  ;;  %305 = vmatpush.msrb.mxu2 %v160_v21  ;;  %v364_v61 = vld [vmem:[%s664_s5 + $0x60] sm:$0xff]  ;;  %v363_v63 = vld [vmem:[%s664_s5 + $0x58] sm:$0xff]  ;;  %v362_v1 = vld [vmem:[%s664_s5 + $0x50] sm:$0xff] }
  0x36   :  { %255 = vmatpush.msrb.mxu0 %v138_v11  ;;  %331 = vmatpush.msrb.mxu3 %v326_v22  ;;  %v361_v3 = vld [vmem:[%s664_s5 + $0x48] sm:$0xff]  ;;  %v360_v5 = vld [vmem:[%s664_s5 + $0x40] sm:$0xff]  ;;  %v359_v7 = vld [vmem:[%s664_s5 + $0x38] sm:$0xff] }
  0x37   :  { %275 = vmatpush.msrb.mxu1 %v154_v12  ;;  %411 = vmatmul.msk.f32.vlgmr.msrb.gmra.mxu2 %vm166_vm0, %v63_v25  ;;  %v358_v9 = vld [vmem:[%s664_s5 + $0x30] sm:$0xff]  ;;  %v357_v11 = vld [vmem:[%s664_s5 + $0x28] sm:$0xff]  ;;  %v356_v13 = vld [vmem:[%s664_s5 + $0x20] sm:$0xff] }
  0x38   :  { %256 = vmatpush.msrb.mxu0 %v137_v15  ;;  %332 = vmatpush.msrb.mxu3 %v325_v26  ;;  %v355_v14 = vld [vmem:[%s664_s5 + $0x18] sm:$0xff]  ;;  %v354_v22 = vld [vmem:[%s664_s5 + $0x10] sm:$0xff]  ;;  %v418_v25 = vld [vmem:[%s663_s4] ss:$0 sm:$0xff] }
  0x39   :  { %276 = vmatpush.msrb.mxu1 %v153_v16  ;;  %372 = vmatpush.msra.mxu2 %v367_v57 }
  0x3a   :  { %257 = vmatpush.msrb.mxu0 %v136_v19  ;;  %333 = vmatpush.msrb.mxu3 %v324_v29  ;;  %v419_v29 = vld [vmem:[%s665_s6] ss:$0 sm:$0xff] }
  0x3b   :  { %277 = vmatpush.msrb.mxu1 %v152_v20  ;;  %373 = vmatpush.msra.mxu2 %v366_v58 }
  0x3c   :  { %258 = vmatpush.msrb.mxu0 %v135_v23  ;;  %334 = vmatpush.msrb.mxu3 %v323_v32  ;;  %v353_v23 = vld [vmem:[%s664_s5 + $0x8] sm:$0xff] }
  0x3d   :  { %278 = vmatpush.msrb.mxu1 %v151_v24  ;;  %374 = vmatpush.msra.mxu2 %v365_v59  ;;  %v352_v24 = vld [vmem:[%s664_s5] sm:$0xff] }
  0x3e   :  { %259 = vmatpush.msrb.mxu0 %v134_v27  ;;  %335 = vmatpush.msrb.mxu3 %v322_v35 }
  0x3f   :  { %279 = vmatpush.msrb.mxu1 %v150_v28  ;;  %375 = vmatpush.msra.mxu2 %v364_v61 }
  0x40   :  { %260 = vmatpush.msrb.mxu0 %v133_v30  ;;  %336 = vmatpush.msrb.mxu3 %v321_v38 }
  0x41   :  { %280 = vmatpush.msrb.mxu1 %v149_v31  ;;  %376 = vmatpush.msra.mxu2 %v363_v63 }
  0x42   :  { %261 = vmatpush.msrb.mxu0 %v132_v33  ;;  %337 = vmatpush.msrb.mxu3 %v320_v41 }
  0x43   :  { %281 = vmatpush.msrb.mxu1 %v148_v34  ;;  %377 = vmatpush.msra.mxu2 %v362_v1 }
  0x44   :  { %262 = vmatpush.msrb.mxu0 %v131_v36  ;;  %338 = vmatpush.msrb.mxu3 %v319_v48 }
  0x45   :  { %282 = vmatpush.msrb.mxu1 %v147_v37  ;;  %378 = vmatpush.msra.mxu2 %v361_v3 }
  0x46   :  { %263 = vmatpush.msrb.mxu0 %v130_v39  ;;  %339 = vmatpush.msrb.mxu3 %v318_v49 }
  0x47   :  { %283 = vmatpush.msrb.mxu1 %v146_v40  ;;  %379 = vmatpush.msra.mxu2 %v360_v5 }
  0x48   :  { %264 = vmatpush.msrb.mxu0 %v129_v42  ;;  %340 = vmatpush.msrb.mxu3 %v317_v50 }
  0x49   :  { %284 = vmatpush.msrb.mxu1 %v145_v43  ;;  %380 = vmatpush.msra.mxu2 %v359_v7 }
  0x4a   :  { %265 = vmatpush.msrb.mxu0 %v128_v44  ;;  %341 = vmatpush.msrb.mxu3 %v316_v51 }
  0x4b   :  { %285 = vmatpush.msrb.mxu1 %v144_v45  ;;  %266 = vmatmul.f32.vlgmr.msrb.gmra.mxu0 %v61_v46 }
  0x4c   :  { %286 = vmatmul.f32.vlgmr.msrb.gmra.mxu1 %v62_v47  ;;  %342 = vmatpush.msrb.mxu3 %v315_v52 }
  0x4d   :  { %381 = vmatpush.msra.mxu2 %v358_v9 }
  0x4e   :  { %343 = vmatpush.msrb.mxu3 %v314_v53 }
  0x4f   :  { %382 = vmatpush.msra.mxu2 %v357_v11 }
  0x50   :  { %344 = vmatpush.msrb.mxu3 %v313_v54 }
  0x51   :  { %383 = vmatpush.msra.mxu2 %v356_v13 }
  0x52   :  { %345 = vmatpush.msrb.mxu3 %v312_v55 }
  0x53   :  { %384 = vmatpush.msra.mxu2 %v355_v14 }
  0x54   :  { %346 = vmatpush.msrb.mxu3 %v311_v56 }
  0x55   :  { %385 = vmatpush.msra.mxu2 %v354_v22 }
  0x57   :  { %386 = vmatpush.msra.mxu2 %v353_v23 }
  0x59   :  { %387 = vmatpush.msra.mxu2 %v352_v24 }
  0xb0   :  { %v187_v62 = vpop.f32.mrf.mxu0 }
  0xb1   :  { %v188_v0 = vadd.f32 %v417_v60, %v187_v62  ;;  %v207_v2 = vpop.f32.mrf.mxu1 }
  0xb2   :  { %v227_v6 = vpop.f32.mrf.mxu2 }
  0xb3   :  { %v208_v4 = vadd.f32 %v207_v2, %v188_v0 }
  0xb5   :  { %v228_v8 = vadd.f32 %v227_v6, %v208_v4  ;;  %v247_v10 = vpop.f32.mrf.mxu3 }
  0xb7   :  { %v248_v12 = vadd.f32 %v247_v10, %v228_v8 }
  0xba   :  { %v307_v18 = vpop.f32.mrf.mxu2 }
  0xc8   :  { %v267_v15 = vpop.f32.mrf.mxu0 }
  0xc9   :  { %v287_v16 = vpop.f32.mrf.mxu1  ;;  %v268_v17 = vadd.f32 %v267_v15, %v248_v12 }
  0xcb   :  { %v288_v19 = vadd.f32 %v287_v16, %v268_v17 }
  0xcd   :  { %v308_v20 = vadd.f32 %v307_v18, %v288_v19 }
  0xcf   :  { %v310_v21 = vmax.f32 %v308_v20, 0.0 }
  0xd1   :  { %347 = vmatmul.f32.vlgmr.msrb.gmra.mxu3 %v310_v21 }
 0x154   :  { %v348_v26 = vpop.f32.mrf.mxu3 }
 0x155   :  { %v349_v27 = vadd.f32 %v418_v25, %v348_v26 }
 0x157   :  { %v351_v28 = vmax.f32 %v349_v27, 0.0 }
 0x159   :  { %388 = vmatmul.f32.vlgmr.msra.gmra.mxu2 %v351_v28 }
 0x1dc   :  { %v389_v30 = vpop.f32.mrf.mxu2 }
 0x1dd   :  { %v390_v31 = vadd.f32 %v419_v29, %v389_v30 }
 0x1df   :  { %392 = vst.msk [vmem:[#allocation7] sm:$0xff] %vm166_vm0, %v390_v31 }
 0x1e0   :  { %403 = dma.vmem_to_hbm [thread:$0]  %s399_s29, 128, %s401_s2, [#allocation4]  }
 0x1e1   :  { %496 = dma.done.wait [#allocation4], 128  }
 0x1e2   :  { %497 = vsyncadd [#allocation4], 4294967168 }
 0x1e3   :  { %408 = vsyncpa [#allocation3], 1 }
 0x1e4   :  { %409 = vsyncpa [#allocation6], 1 }
 0x1e5   :  { %410 = vsyncpa [#allocation4], 1 }

</bundles_post_ra>
